<compile_context>
chip_gen: v7x
topology: tpu7x:2x2x1
jax: 0.10.0
libtpu: 0.0.40
codegen_flags: <defaults>
</compile_context>

<pallas_src>
import functools

import jax
import jax.numpy as jnp
from jax.experimental import pallas as pl
from jax.experimental.pallas import tpu as pltpu


def _pick_tile(s, target=256):
    """Largest divisor of s that is <= target (prefer multiples of 8)."""
    if s <= target:
        return s
    best = None
    for t in range(target, 0, -1):
        if s % t == 0:
            if t % 8 == 0:
                return t
            if best is None:
                best = t
    return best if best is not None else s


def _mhsa_kernel(xq_ref, xkv_ref, wq_ref, wkv_ref, wo_ref,
                 bq_ref, bkv_ref, bo_ref, o_ref,
                 q_scr, m_scr, l_scr, acc_scr, *, num_heads, head_dim):
    """Flash-style MHSA for one (batch, q-tile) with streaming kv-tiles.

    xq_ref  : (1, tq, D)   query-side activations
    xkv_ref : (1, tk, D)   key/value-side activations
    wq_ref  : (D, D)       packed Q weights (scale folded in)
    wkv_ref : (D, 2D)      packed [K | V] weights
    wo_ref  : (D, D)       packed output-projection weights
    bq_ref  : (1, D)       packed Q bias (scale folded in)
    bkv_ref : (1, 2D)      packed [K | V] bias
    bo_ref  : (1, D)       output bias
    o_ref   : (1, tq, D)
    scratch : q (H, tq, Dh), m/l (H, tq, 1), acc (H, tq, Dh)  — all f32
    """
    H, Dh = num_heads, head_dim
    D = H * Dh
    ki = pl.program_id(2)
    nk = pl.num_programs(2)

    @pl.when(ki == 0)
    def _():
        # Q projection for this q-tile (done once per q-tile, not per kv step).
        xq = xq_ref[0]                                              # (tq, D)
        q = jnp.dot(xq, wq_ref[...],
                    preferred_element_type=jnp.float32) + bq_ref[...]
        tq = q.shape[0]
        # split heads: columns are head-major (h, dh)
        q_scr[...] = jnp.transpose(q.reshape(tq, H, Dh), (1, 0, 2))  # (H, tq, Dh)
        m_scr[...] = jnp.full_like(m_scr, -jnp.inf)
        l_scr[...] = jnp.zeros_like(l_scr)
        acc_scr[...] = jnp.zeros_like(acc_scr)

    # Fused K/V projection for the current kv-tile: one (tk, D) x (D, 2D) matmul.
    xkv = xkv_ref[0]                                                # (tk, D)
    kv = jnp.dot(xkv, wkv_ref[...],
                 preferred_element_type=jnp.float32) + bkv_ref[...]  # (tk, 2D)
    tk = kv.shape[0]
    k = jnp.transpose(kv[:, :D].reshape(tk, H, Dh), (1, 0, 2))       # (H, tk, Dh)
    v = jnp.transpose(kv[:, D:].reshape(tk, H, Dh), (1, 0, 2))       # (H, tk, Dh)

    q = q_scr[...]                                                   # (H, tq, Dh)
    # Scale is already folded into q (via wq/bq).
    s = jnp.einsum("hqd,hkd->hqk", q, k,
                   preferred_element_type=jnp.float32)               # (H, tq, tk)

    # Online softmax update.
    m_prev = m_scr[...]                                              # (H, tq, 1)
    m_new = jnp.maximum(m_prev, jnp.max(s, axis=-1, keepdims=True))
    alpha = jnp.exp(m_prev - m_new)
    p = jnp.exp(s - m_new)                                           # (H, tq, tk)
    l_scr[...] = alpha * l_scr[...] + jnp.sum(p, axis=-1, keepdims=True)
    acc_scr[...] = alpha * acc_scr[...] + jnp.einsum(
        "hqk,hkd->hqd", p, v, preferred_element_type=jnp.float32)    # (H, tq, Dh)
    m_scr[...] = m_new

    @pl.when(ki == nk - 1)
    def _():
        ctx = acc_scr[...] * pl.reciprocal(l_scr[...], approx=True)  # (H, tq, Dh)
        tq = ctx.shape[1]
        ctx2 = jnp.transpose(ctx, (1, 0, 2)).reshape(tq, D)          # (tq, D)
        out = jnp.dot(ctx2, wo_ref[...],
                      preferred_element_type=jnp.float32) + bo_ref[...]
        o_ref[0] = out.astype(o_ref.dtype)


def mhsa_pallas(x, wq, wk, wv, wo, bq, bk, bv, bo, *, tq=None, tk=None):
    B, S, D = x.shape
    H, _, Dh = wq.shape
    assert H * Dh == D, "hidden dim must equal num_heads * head_dim"
    scale = 1.0 / float(Dh) ** 0.5

    # --- Pack weights into lane-dense 2-D matrices (trace time) --------------
    # (H, D, Dh) -> (D, H*Dh) with head-major columns; fold scale into Q.
    w_q = jnp.transpose(wq, (1, 0, 2)).reshape(D, D) * scale
    b_q = bq.reshape(1, D) * scale
    w_k = jnp.transpose(wk, (1, 0, 2)).reshape(D, D)
    w_v = jnp.transpose(wv, (1, 0, 2)).reshape(D, D)
    w_kv = jnp.concatenate([w_k, w_v], axis=1)                  # (D, 2D)
    b_kv = jnp.concatenate([bk.reshape(1, D), bv.reshape(1, D)], axis=1)
    w_o = wo.reshape(D, D)                                      # (H*Dh, D)
    b_o = bo.reshape(1, D)

    # --- Tiling ---------------------------------------------------------------
    if tq is None:
        tq = _pick_tile(S)
    if tk is None:
        tk = _pick_tile(S)
    assert S % tq == 0 and S % tk == 0

    kernel = functools.partial(_mhsa_kernel, num_heads=H, head_dim=Dh)
    const_spec = lambda shape: pl.BlockSpec(shape, lambda b, qi, ki: (0,) * len(shape))

    return pl.pallas_call(
        kernel,
        out_shape=jax.ShapeDtypeStruct((B, S, D), x.dtype),
        grid_spec=pltpu.PrefetchScalarGridSpec(
            num_scalar_prefetch=0,
            grid=(B, S // tq, S // tk),
            in_specs=[
                pl.BlockSpec((1, tq, D), lambda b, qi, ki: (b, qi, 0)),  # x (queries)
                pl.BlockSpec((1, tk, D), lambda b, qi, ki: (b, ki, 0)),  # x (keys/vals)
                const_spec((D, D)),        # w_q (scaled)
                const_spec((D, 2 * D)),    # w_kv
                const_spec((D, D)),        # w_o
                const_spec((1, D)),        # b_q (scaled)
                const_spec((1, 2 * D)),    # b_kv
                const_spec((1, D)),        # b_o
            ],
            out_specs=pl.BlockSpec((1, tq, D), lambda b, qi, ki: (b, qi, 0)),
            scratch_shapes=[
                pltpu.VMEM((H, tq, Dh), jnp.float32),  # q (per q-tile)
                pltpu.VMEM((H, tq, 1), jnp.float32),   # running max
                pltpu.VMEM((H, tq, 1), jnp.float32),   # running denom
                pltpu.VMEM((H, tq, Dh), jnp.float32),  # running acc
            ],
        ),
        compiler_params=pltpu.CompilerParams(
            dimension_semantics=("parallel", "parallel", "arbitrary"),
            vmem_limit_bytes=32 * 1024 * 1024,
        ),
    )(x, x, w_q, w_kv, w_o, b_q, b_kv, b_o)


def mhsa_ref(x, wq, wk, wv, wo, bq, bk, bv, bo):
    """Plain-JAX reference for correctness checking."""
    Dh = wq.shape[-1]
    scale = 1.0 / float(Dh) ** 0.5
    q = jnp.einsum("bsd,hde->bhse", x, wq) + bq[None, :, :, :]
    k = jnp.einsum("bsd,hde->bhse", x, wk) + bk[None, :, :, :]
    v = jnp.einsum("bsd,hde->bhse", x, wv) + bv[None, :, :, :]
    scores = jnp.einsum("bhqe,bhke->bhqk", q, k) * scale
    attn = jax.nn.softmax(scores, axis=-1)
    ctx = jnp.einsum("bhqk,bhke->bhqe", attn, v)
    out = jnp.einsum("bhse,hed->bsd", ctx, wo) + bo[None, :, :]
    return out


if __name__ == "__main__":
    B, S, D, H = 2, 8, 32, 4
    Dh = D // H

    key = jax.random.PRNGKey(0)
    ks = jax.random.split(key, 10)
    x = jax.random.normal(ks[0], (B, S, D), dtype=jnp.float32)
    wq = jax.random.normal(ks[1], (H, D, Dh), dtype=jnp.float32) * 0.1
    wk = jax.random.normal(ks[2], (H, D, Dh), dtype=jnp.float32) * 0.1
    wv = jax.random.normal(ks[3], (H, D, Dh), dtype=jnp.float32) * 0.1
    wo = jax.random.normal(ks[4], (H, Dh, D), dtype=jnp.float32) * 0.1
    bq = jax.random.normal(ks[5], (H, 1, Dh), dtype=jnp.float32) * 0.01
    bk = jax.random.normal(ks[6], (H, 1, Dh), dtype=jnp.float32) * 0.01
    bv = jax.random.normal(ks[7], (H, 1, Dh), dtype=jnp.float32) * 0.01
    bo = jax.random.normal(ks[8], (1, D), dtype=jnp.float32) * 0.01

    out = mhsa_pallas(x, wq, wk, wv, wo, bq, bk, bv, bo)
    out = jax.block_until_ready(out)

    ref = mhsa_ref(x, wq, wk, wv, wo, bq, bk, bv, bo)
    assert out.shape == (B, S, D)
    # approx=True reciprocal introduces ~1e-3 relative error in the softmax norm.
    assert jnp.allclose(out, ref, atol=5e-3, rtol=5e-3), "mismatch vs reference"

    print("KERNEL_OK")
</pallas_src>

<mosaic_0001>
module attributes {stable_mosaic.version = 11 : i64} {
  func.func @_mhsa_kernel(%arg0: i32, %arg1: i32, %arg2: i32, %arg3: memref<1x8x32xf32, #tpu.memory_space<vmem>>, %arg4: memref<1x8x32xf32, #tpu.memory_space<vmem>>, %arg5: memref<32x32xf32, #tpu.memory_space<vmem>>, %arg6: memref<32x64xf32, #tpu.memory_space<vmem>>, %arg7: memref<32x32xf32, #tpu.memory_space<vmem>>, %arg8: memref<1x32xf32, #tpu.memory_space<vmem>>, %arg9: memref<1x64xf32, #tpu.memory_space<vmem>>, %arg10: memref<1x32xf32, #tpu.memory_space<vmem>>, %arg11: memref<1x8x32xf32, #tpu.memory_space<vmem>>, %arg12: memref<4x8x8xf32, #tpu.memory_space<vmem>>, %arg13: memref<4x8x1xf32, #tpu.memory_space<vmem>>, %arg14: memref<4x8x1xf32, #tpu.memory_space<vmem>>, %arg15: memref<4x8x8xf32, #tpu.memory_space<vmem>>) attributes {dimension_semantics = [#tpu.dimension_semantics<parallel>, #tpu.dimension_semantics<parallel>, #tpu.dimension_semantics<arbitrary>], iteration_bounds = array<i64: 2, 1, 1>, scalar_prefetch = 0 : i64, scratch_operands = 4 : i64, tpu.core_type = #tpu.core_type<tc>, window_params = [{transform_indices = @transform_0, window_bounds = array<i64: 1, 8, 32>}, {transform_indices = @transform_1, window_bounds = array<i64: 1, 8, 32>}, {pipeline_mode = #tpu.pipeline_mode<synchronous>, transform_indices = @transform_2, window_bounds = array<i64: 32, 32>}, {pipeline_mode = #tpu.pipeline_mode<synchronous>, transform_indices = @transform_3, window_bounds = array<i64: 32, 64>}, {pipeline_mode = #tpu.pipeline_mode<synchronous>, transform_indices = @transform_4, window_bounds = array<i64: 32, 32>}, {pipeline_mode = #tpu.pipeline_mode<synchronous>, transform_indices = @transform_5, window_bounds = array<i64: 1, 32>}, {pipeline_mode = #tpu.pipeline_mode<synchronous>, transform_indices = @transform_6, window_bounds = array<i64: 1, 64>}, {pipeline_mode = #tpu.pipeline_mode<synchronous>, transform_indices = @transform_7, window_bounds = array<i64: 1, 32>}, {transform_indices = @transform_8, window_bounds = array<i64: 1, 8, 32>}]} {
    %c0_i32 = arith.constant 0 : i32
    %0 = arith.cmpi eq, %arg2, %c0_i32 : i32
    %1 = arith.extui %0 : i1 to i32
    %c0_i32_0 = arith.constant 0 : i32
    %2 = arith.cmpi ne, %1, %c0_i32_0 : i32
    scf.if %2 {
      %c0_34 = arith.constant 0 : index
      %c0_35 = arith.constant 0 : index
      %c0_36 = arith.constant 0 : index
      %43 = vector.load %arg3[%c0_34, %c0_35, %c0_36] : memref<1x8x32xf32, #tpu.memory_space<vmem>>, vector<1x8x32xf32>
      %44 = vector.shape_cast %43 : vector<1x8x32xf32> to vector<8x32xf32>
      %c0_37 = arith.constant 0 : index
      %c0_38 = arith.constant 0 : index
      %45 = vector.load %arg5[%c0_37, %c0_38] : memref<32x32xf32, #tpu.memory_space<vmem>>, vector<32x32xf32>
      %cst_39 = arith.constant dense<0.000000e+00> : vector<8x32xf32>
      %46 = tpu.matmul %44, %45, %cst_39 {dimension_numbers = #tpu.dot_dimension_numbers<[1], [0], [0], [1], [0, 0, 1, 1], [], []>} : vector<8x32xf32>, vector<32x32xf32>, vector<8x32xf32> -> vector<8x32xf32>
      %c0_40 = arith.constant 0 : index
      %c0_41 = arith.constant 0 : index
      %47 = vector.load %arg8[%c0_40, %c0_41] : memref<1x32xf32, #tpu.memory_space<vmem>>, vector<1x32xf32>
      %48 = vector.broadcast %47 : vector<1x32xf32> to vector<8x32xf32>
      %49 = arith.addf %46, %48 : vector<8x32xf32>
      %50 = vector.shape_cast %49 : vector<8x32xf32> to vector<8x4x8xf32>
      %51 = tpu.transpose %50, [1, 0, 2] : vector<8x4x8xf32> -> vector<4x8x8xf32>
      %c0_42 = arith.constant 0 : index
      %c0_43 = arith.constant 0 : index
      %c0_44 = arith.constant 0 : index
      %52 = vector.load %arg12[%c0_42, %c0_43, %c0_44] : memref<4x8x8xf32, #tpu.memory_space<vmem>>, vector<4x8x8xf32>
      tpu.vector_store %arg12[%c0_42, %c0_43, %c0_44], %51 {strides = array<i32>} : memref<4x8x8xf32, #tpu.memory_space<vmem>>, vector<4x8x8xf32>,
      %cst_45 = arith.constant 0xFF800000 : f32
      %53 = vector.broadcast %cst_45 : f32 to vector<4x8x1xf32>
      %c0_46 = arith.constant 0 : index
      %c0_47 = arith.constant 0 : index
      %c0_48 = arith.constant 0 : index
      %54 = vector.load %arg13[%c0_46, %c0_47, %c0_48] : memref<4x8x1xf32, #tpu.memory_space<vmem>>, vector<4x8x1xf32>
      tpu.vector_store %arg13[%c0_46, %c0_47, %c0_48], %53 {strides = array<i32>} : memref<4x8x1xf32, #tpu.memory_space<vmem>>, vector<4x8x1xf32>,
      %cst_49 = arith.constant 0.000000e+00 : f32
      %55 = vector.broadcast %cst_49 : f32 to vector<4x8x1xf32>
      %c0_50 = arith.constant 0 : index
      %c0_51 = arith.constant 0 : index
      %c0_52 = arith.constant 0 : index
      %56 = vector.load %arg14[%c0_50, %c0_51, %c0_52] : memref<4x8x1xf32, #tpu.memory_space<vmem>>, vector<4x8x1xf32>
      tpu.vector_store %arg14[%c0_50, %c0_51, %c0_52], %55 {strides = array<i32>} : memref<4x8x1xf32, #tpu.memory_space<vmem>>, vector<4x8x1xf32>,
      %cst_53 = arith.constant 0.000000e+00 : f32
      %57 = vector.broadcast %cst_53 : f32 to vector<4x8x8xf32>
      %c0_54 = arith.constant 0 : index
      %c0_55 = arith.constant 0 : index
      %c0_56 = arith.constant 0 : index
      %58 = vector.load %arg15[%c0_54, %c0_55, %c0_56] : memref<4x8x8xf32, #tpu.memory_space<vmem>>, vector<4x8x8xf32>
      tpu.vector_store %arg15[%c0_54, %c0_55, %c0_56], %57 {strides = array<i32>} : memref<4x8x8xf32, #tpu.memory_space<vmem>>, vector<4x8x8xf32>,
    } else {
    }
    %c0 = arith.constant 0 : index
    %c0_1 = arith.constant 0 : index
    %c0_2 = arith.constant 0 : index
    %3 = vector.load %arg4[%c0, %c0_1, %c0_2] : memref<1x8x32xf32, #tpu.memory_space<vmem>>, vector<1x8x32xf32>
    %4 = vector.shape_cast %3 : vector<1x8x32xf32> to vector<8x32xf32>
    %c0_3 = arith.constant 0 : index
    %c0_4 = arith.constant 0 : index
    %5 = vector.load %arg6[%c0_3, %c0_4] : memref<32x64xf32, #tpu.memory_space<vmem>>, vector<32x64xf32>
    %cst = arith.constant dense<0.000000e+00> : vector<8x64xf32>
    %6 = tpu.matmul %4, %5, %cst {dimension_numbers = #tpu.dot_dimension_numbers<[1], [0], [0], [1], [0, 0, 1, 1], [], []>} : vector<8x32xf32>, vector<32x64xf32>, vector<8x64xf32> -> vector<8x64xf32>
    %c0_5 = arith.constant 0 : index
    %c0_6 = arith.constant 0 : index
    %7 = vector.load %arg9[%c0_5, %c0_6] : memref<1x64xf32, #tpu.memory_space<vmem>>, vector<1x64xf32>
    %8 = vector.broadcast %7 : vector<1x64xf32> to vector<8x64xf32>
    %9 = arith.addf %6, %8 : vector<8x64xf32>
    %10 = vector.extract_strided_slice %9 {offsets = [0, 0], sizes = [8, 32], strides = [1, 1]} : vector<8x64xf32> to vector<8x32xf32>
    %11 = vector.shape_cast %10 : vector<8x32xf32> to vector<8x4x8xf32>
    %12 = tpu.transpose %11, [1, 0, 2] : vector<8x4x8xf32> -> vector<4x8x8xf32>
    %13 = vector.extract_strided_slice %9 {offsets = [0, 32], sizes = [8, 32], strides = [1, 1]} : vector<8x64xf32> to vector<8x32xf32>
    %14 = vector.shape_cast %13 : vector<8x32xf32> to vector<8x4x8xf32>
    %15 = tpu.transpose %14, [1, 0, 2] : vector<8x4x8xf32> -> vector<4x8x8xf32>
    %c0_7 = arith.constant 0 : index
    %c0_8 = arith.constant 0 : index
    %c0_9 = arith.constant 0 : index
    %16 = vector.load %arg12[%c0_7, %c0_8, %c0_9] : memref<4x8x8xf32, #tpu.memory_space<vmem>>, vector<4x8x8xf32>
    "tpu.trace_start"() <{level = 10 : i32, message = "hqd,hkd->hqk"}> : () -> ()
    %cst_10 = arith.constant dense<0.000000e+00> : vector<4x8x8xf32>
    %17 = tpu.matmul %16, %12, %cst_10 {dimension_numbers = #tpu.dot_dimension_numbers<[2], [2], [1], [1], [0, 0, 0, 1, 1, 1], [0], [0]>} : vector<4x8x8xf32>, vector<4x8x8xf32>, vector<4x8x8xf32> -> vector<4x8x8xf32>
    "tpu.trace_stop"() : () -> ()
    %c0_11 = arith.constant 0 : index
    %c0_12 = arith.constant 0 : index
    %c0_13 = arith.constant 0 : index
    %18 = vector.load %arg13[%c0_11, %c0_12, %c0_13] : memref<4x8x1xf32, #tpu.memory_space<vmem>>, vector<4x8x1xf32>
    %cst_14 = arith.constant dense<0xFF800000> : vector<4x8xf32>
    %19 = vector.multi_reduction <maximumf>, %17, %cst_14 [2] : vector<4x8x8xf32> to vector<4x8xf32>
    %20 = vector.shape_cast %19 : vector<4x8xf32> to vector<4x8x1xf32>
    %21 = arith.maximumf %18, %20 : vector<4x8x1xf32>
    %22 = arith.subf %18, %21 : vector<4x8x1xf32>
    %23 = math.exp %22 : vector<4x8x1xf32>
    %24 = vector.broadcast %21 : vector<4x8x1xf32> to vector<4x8x8xf32>
    %25 = arith.subf %17, %24 : vector<4x8x8xf32>
    %26 = math.exp %25 : vector<4x8x8xf32>
    %c0_15 = arith.constant 0 : index
    %c0_16 = arith.constant 0 : index
    %c0_17 = arith.constant 0 : index
    %27 = vector.load %arg14[%c0_15, %c0_16, %c0_17] : memref<4x8x1xf32, #tpu.memory_space<vmem>>, vector<4x8x1xf32>
    %28 = arith.mulf %23, %27 : vector<4x8x1xf32>
    %cst_18 = arith.constant dense<0.000000e+00> : vector<4x8xf32>
    %29 = vector.multi_reduction <add>, %26, %cst_18 [2] : vector<4x8x8xf32> to vector<4x8xf32>
    %30 = vector.shape_cast %29 : vector<4x8xf32> to vector<4x8x1xf32>
    %31 = arith.addf %28, %30 : vector<4x8x1xf32>
    %c0_19 = arith.constant 0 : index
    %c0_20 = arith.constant 0 : index
    %c0_21 = arith.constant 0 : index
    %32 = vector.load %arg14[%c0_19, %c0_20, %c0_21] : memref<4x8x1xf32, #tpu.memory_space<vmem>>, vector<4x8x1xf32>
    tpu.vector_store %arg14[%c0_19, %c0_20, %c0_21], %31 {strides = array<i32>} : memref<4x8x1xf32, #tpu.memory_space<vmem>>, vector<4x8x1xf32>,
    %c0_22 = arith.constant 0 : index
    %c0_23 = arith.constant 0 : index
    %c0_24 = arith.constant 0 : index
    %33 = vector.load %arg15[%c0_22, %c0_23, %c0_24] : memref<4x8x8xf32, #tpu.memory_space<vmem>>, vector<4x8x8xf32>
    %34 = vector.broadcast %23 : vector<4x8x1xf32> to vector<4x8x8xf32>
    %35 = arith.mulf %34, %33 : vector<4x8x8xf32>
    "tpu.trace_start"() <{level = 10 : i32, message = "hqk,hkd->hqd"}> : () -> ()
    %cst_25 = arith.constant dense<0.000000e+00> : vector<4x8x8xf32>
    %36 = tpu.matmul %26, %15, %cst_25 {dimension_numbers = #tpu.dot_dimension_numbers<[2], [1], [1], [2], [0, 0, 0, 1, 1, 2], [0], [0]>} : vector<4x8x8xf32>, vector<4x8x8xf32>, vector<4x8x8xf32> -> vector<4x8x8xf32>
    "tpu.trace_stop"() : () -> ()
    %37 = arith.addf %35, %36 : vector<4x8x8xf32>
    %c0_26 = arith.constant 0 : index
    %c0_27 = arith.constant 0 : index
    %c0_28 = arith.constant 0 : index
    %38 = vector.load %arg15[%c0_26, %c0_27, %c0_28] : memref<4x8x8xf32, #tpu.memory_space<vmem>>, vector<4x8x8xf32>
    tpu.vector_store %arg15[%c0_26, %c0_27, %c0_28], %37 {strides = array<i32>} : memref<4x8x8xf32, #tpu.memory_space<vmem>>, vector<4x8x8xf32>,
    %c0_29 = arith.constant 0 : index
    %c0_30 = arith.constant 0 : index
    %c0_31 = arith.constant 0 : index
    %39 = vector.load %arg13[%c0_29, %c0_30, %c0_31] : memref<4x8x1xf32, #tpu.memory_space<vmem>>, vector<4x8x1xf32>
    tpu.vector_store %arg13[%c0_29, %c0_30, %c0_31], %21 {strides = array<i32>} : memref<4x8x1xf32, #tpu.memory_space<vmem>>, vector<4x8x1xf32>,
    %c0_i32_32 = arith.constant 0 : i32
    %40 = arith.cmpi eq, %arg2, %c0_i32_32 : i32
    %41 = arith.extui %40 : i1 to i32
    %c0_i32_33 = arith.constant 0 : i32
    %42 = arith.cmpi ne, %41, %c0_i32_33 : i32
    scf.if %42 {
      %c0_34 = arith.constant 0 : index
      %c0_35 = arith.constant 0 : index
      %c0_36 = arith.constant 0 : index
      %43 = vector.load %arg15[%c0_34, %c0_35, %c0_36] : memref<4x8x8xf32, #tpu.memory_space<vmem>>, vector<4x8x8xf32>
      %c0_37 = arith.constant 0 : index
      %c0_38 = arith.constant 0 : index
      %c0_39 = arith.constant 0 : index
      %44 = vector.load %arg14[%c0_37, %c0_38, %c0_39] : memref<4x8x1xf32, #tpu.memory_space<vmem>>, vector<4x8x1xf32>
      %45 = tpu.reciprocal %44 {approx = true} : vector<4x8x1xf32> -> vector<4x8x1xf32>
      %46 = vector.broadcast %45 : vector<4x8x1xf32> to vector<4x8x8xf32>
      %47 = arith.mulf %43, %46 : vector<4x8x8xf32>
      %48 = tpu.transpose %47, [1, 0, 2] : vector<4x8x8xf32> -> vector<8x4x8xf32>
      %49 = vector.shape_cast %48 : vector<8x4x8xf32> to vector<8x32xf32>
      %c0_40 = arith.constant 0 : index
      %c0_41 = arith.constant 0 : index
      %50 = vector.load %arg7[%c0_40, %c0_41] : memref<32x32xf32, #tpu.memory_space<vmem>>, vector<32x32xf32>
      %cst_42 = arith.constant dense<0.000000e+00> : vector<8x32xf32>
      %51 = tpu.matmul %49, %50, %cst_42 {dimension_numbers = #tpu.dot_dimension_numbers<[1], [0], [0], [1], [0, 0, 1, 1], [], []>} : vector<8x32xf32>, vector<32x32xf32>, vector<8x32xf32> -> vector<8x32xf32>
      %c0_43 = arith.constant 0 : index
      %c0_44 = arith.constant 0 : index
      %52 = vector.load %arg10[%c0_43, %c0_44] : memref<1x32xf32, #tpu.memory_space<vmem>>, vector<1x32xf32>
      %53 = vector.broadcast %52 : vector<1x32xf32> to vector<8x32xf32>
      %54 = arith.addf %51, %53 : vector<8x32xf32>
      %c0_45 = arith.constant 0 : index
      %c0_46 = arith.constant 0 : index
      %c0_47 = arith.constant 0 : index
      %55 = vector.load %arg11[%c0_45, %c0_46, %c0_47] : memref<1x8x32xf32, #tpu.memory_space<vmem>>, vector<1x8x32xf32>
      %56 = vector.shape_cast %55 : vector<1x8x32xf32> to vector<8x32xf32>
      %57 = vector.shape_cast %54 : vector<8x32xf32> to vector<1x8x32xf32>
      tpu.vector_store %arg11[%c0_45, %c0_46, %c0_47], %57 {strides = array<i32>} : memref<1x8x32xf32, #tpu.memory_space<vmem>>, vector<1x8x32xf32>,
    } else {
    }
    return
  }
  func.func @transform_0(%arg0: i32, %arg1: i32, %arg2: i32) -> (i32, i32, i32) {
    %c0_i32 = arith.constant 0 : i32
    %c0_i32_0 = arith.constant 0 : i32
    return %arg0, %arg1, %c0_i32 : i32, i32, i32
  }
  func.func @transform_1(%arg0: i32, %arg1: i32, %arg2: i32) -> (i32, i32, i32) {
    %c0_i32 = arith.constant 0 : i32
    %c0_i32_0 = arith.constant 0 : i32
    return %arg0, %arg2, %c0_i32 : i32, i32, i32
  }
  func.func @transform_2(%arg0: i32, %arg1: i32, %arg2: i32) -> (i32, i32) {
    %c0_i32 = arith.constant 0 : i32
    %c0_i32_0 = arith.constant 0 : i32
    %c0_i32_1 = arith.constant 0 : i32
    return %c0_i32, %c0_i32_0 : i32, i32
  }
  func.func @transform_3(%arg0: i32, %arg1: i32, %arg2: i32) -> (i32, i32) {
    %c0_i32 = arith.constant 0 : i32
    %c0_i32_0 = arith.constant 0 : i32
    %c0_i32_1 = arith.constant 0 : i32
    return %c0_i32, %c0_i32_0 : i32, i32
  }
  func.func @transform_4(%arg0: i32, %arg1: i32, %arg2: i32) -> (i32, i32) {
    %c0_i32 = arith.constant 0 : i32
    %c0_i32_0 = arith.constant 0 : i32
    %c0_i32_1 = arith.constant 0 : i32
    return %c0_i32, %c0_i32_0 : i32, i32
  }
  func.func @transform_5(%arg0: i32, %arg1: i32, %arg2: i32) -> (i32, i32) {
    %c0_i32 = arith.constant 0 : i32
    %c0_i32_0 = arith.constant 0 : i32
    %c0_i32_1 = arith.constant 0 : i32
    return %c0_i32, %c0_i32_0 : i32, i32
  }
  func.func @transform_6(%arg0: i32, %arg1: i32, %arg2: i32) -> (i32, i32) {
    %c0_i32 = arith.constant 0 : i32
    %c0_i32_0 = arith.constant 0 : i32
    %c0_i32_1 = arith.constant 0 : i32
    return %c0_i32, %c0_i32_0 : i32, i32
  }
  func.func @transform_7(%arg0: i32, %arg1: i32, %arg2: i32) -> (i32, i32) {
    %c0_i32 = arith.constant 0 : i32
    %c0_i32_0 = arith.constant 0 : i32
    %c0_i32_1 = arith.constant 0 : i32
    return %c0_i32, %c0_i32_0 : i32, i32
  }
  func.func @transform_8(%arg0: i32, %arg1: i32, %arg2: i32) -> (i32, i32, i32) {
    %c0_i32 = arith.constant 0 : i32
    %c0_i32_0 = arith.constant 0 : i32
    return %arg0, %arg1, %c0_i32 : i32, i32, i32
  }
}

</mosaic_0001>

<bundles_post_ra>
// kernel: tpu_custom_call.1
= control target key start
LH: loop header
LB: loop body
LE: loop exit
PB: predicated region body
PF: predicated region fallthrough
CT: control target
= control target key end

     0   :  { %s3418_s0 = inlined_call_operand.hbm [shape: f32[2,8,32], index: 0, kind: input, shape index: {}]   ;;  %s3419_s1 = inlined_call_operand.hbm [shape: f32[2,8,32], index: 1, kind: input, shape index: {}]   ;;  %s3420_s2 = inlined_call_operand.hbm [shape: f32[32,32], index: 2, kind: input, shape index: {}]   ;;  %s3421_s3 = inlined_call_operand.hbm [shape: f32[32,64], index: 3, kind: input, shape index: {}]   ;;  %s3422_s4 = inlined_call_operand.hbm [shape: f32[32,32], index: 4, kind: input, shape index: {}]   ;;  %s3423_s5 = inlined_call_operand.vmem [shape: f32[1,32], index: 5, kind: input, shape index: {}]   ;;  %s3424_s6 = inlined_call_operand.vmem [shape: f32[1,64], index: 6, kind: input, shape index: {}]   ;;  %s3425_s7 = inlined_call_operand.vmem [shape: f32[1,32], index: 7, kind: input, shape index: {}]   ;;  %s3426_s8 = inlined_call_operand.hbm [shape: f32[2,8,32], index: 8, kind: output, shape index: {}]  }
   0x1   :  { %3434 = sst [smem:[#allocation23_spill]] %s3420_s2 }
   0x2   :  { %3435 = sst [smem:[#allocation24_spill]] %s3421_s3 }
   0x3   :  { %3436 = sst [smem:[#allocation25_spill]] %s3422_s4 }
   0x4   :  { %3437 = sst [smem:[#allocation26_spill]] %s3425_s7 }
   0x5   :  { %3438 = sst [smem:[#allocation27_spill]] %s3426_s8 }
   0x6   :  { %13 = vsyncpa [#allocation7], 0 }
   0x7   :  { %15 = vsyncpa [#allocation7 + $0x1], 0 }
   0x8   :  { %16 = vsyncpa [#allocation10], 0 }
   0x9   :  { %18 = vsyncpa [#allocation10 + $0x1], 0 }
   0xa   :  { %19 = vsyncpa [#allocation13], 0 }
   0xb   :  { %20 = vsyncpa [#allocation8], 0 }
   0xc   :  { %22 = vsyncpa [#allocation8 + $0x1], 0  ;;  %s2840_s27 = smov 0   ;;  %s2842_s28 = smov 0  }
   0xd   :  { %s2844_s29 = smov 0   ;;  %s2846_s30 = smov 0  }
   0xe   :  { %s2848_s9 = smov 0   ;;  %s2850_s10 = smov 0  }
   0xf LB: > { %3439 = sst [smem:[#allocation21_spill]] %s2751_s27  ;;  %s2871_s11 = sadd.s32 4294967295, %s2771_s10   ;;  %s2771_s10 = sphi %s2850_s10, %s28_s10   ;;  %s2767_s9 = sphi %s2848_s9, %s3469_s9   ;;  %s2763_s30 = sphi %s2846_s30, %s3468_s30   ;;  %s2759_s29 = sphi %s2844_s29, %s3467_s29   ;;  %s2755_s28 = sphi %s2842_s28, %s3466_s28   ;;  %s2751_s27 = sphi %s2840_s27, %s3465_s27  }
  0x10   : > { %s2224_s12 = sadd.s32 4294967294, %s2771_s10   ;;  %p69_p0 = scmp.ne.s32.totalorder %s2755_s28, %s2751_s27 }
  0x11   : > { %p3427_p1 = scmp.eq.s32.totalorder %s2871_s11, 0  ;;  %p255_p3 = scmp.eq.s32.totalorder %s2224_s12, 1 }
  0x12   : > { %p2225_p5 = scmp.ge.s32.totalorder %s2771_s10, 1  ;;  %p262_p7 = scmp.lt.s32.totalorder %s2771_s10, 3 }
  0x13   : > { %p2880_p4 = por %p3427_p1, %p69_p0  ;;  %p2885_p6 = por %p255_p3, %p69_p0 }
  0x14   : > { %p2890_p8 = pnand %p2225_p5, %p262_p7  ;;  %s2773_s16 = smov [#allocation11]  }
  0x15   : > { %s3440_s13 = scalar_select %p2880_p4, 1, 0 }
  0x16   : > { %s3441_s14 = scalar_select %p2885_p6, 1, 0 }
  0x17   : > { %s3443_s15 = scalar_select %p2890_p8, 1, 0 }
  0x18   : > { %3442 = sst [smem:[#allocation22_spill]] %s3441_s14  ;;  %s274_s17 = sshll.u32 %s2773_s16, 4  ;;  %s2894_s17 = int_to_ptr.vmem [resolvable:$true] %s274_s17 }
  0x19   : > { %p2411_p9 = pneg %p2890_p8  ;;  %s2774_s19 = smov [#allocation12]  }
  0x1a   : > { %s287_s20 = sshll.u32 %s2774_s19, 4  ;;  %s2775_s21 = smov [#allocation14]   ;;  %s2905_s20 = int_to_ptr.vmem [resolvable:$true] %s287_s20 }
  0x1b   : > { %p2901_p11 = pnand %p2411_p9, %p3427_p1  ;;  %s2907_s22 = sshll.u32 %s2775_s21, 4  ;;  %s301_s22 = int_to_ptr.vmem [resolvable:$true] %s2907_s22 }
  0x1c   : > { %s3445_s2 = sld [smem:[#allocation23_spill]] }
  0x1d   : > { %p2917_p13 = pneg %p2901_p11 }
  0x22   : > { %s2533_s25 = scalar_lea.hbm %s3445_s2, 512 }
  0x23   : > { %p2534_p12 = scmp.ne.s32.totalorder %s3445_s2, %s2533_s25  ;;  %p2540_p5 = scmp.lt.u32.totalorder %s2533_s25, %s3445_s2 }
  0x25   : > { %p2536_p0 = pnand %p2917_p13, %p2534_p12 }
  0x27   : > { %p2537_p3 = pneg %p2536_p0 }
  0x29   : > { %p2542_p7 = pnand %p2540_p5, %p2537_p3 }
  0x2b   : > { %2545 = shalt.err (!%p2542_p7)
}
  0x2c   : > { %s2546_s23 = scalar_lea.vmem %s2894_s17, 512  ;;  %p2554_p2 = scmp.lt.s32.totalorder %s2894_s17, %s2894_s17 }
  0x2d   : > { %p2547_p9 = scmp.ne.s32.totalorder %s2894_s17, %s2546_s23  ;;  %p2555_p6 = scmp.lt.s32.totalorder %s2546_s23, %s2546_s23 }
  0x2f   : > { %p2549_p10 = pnand %p2547_p9, %p2917_p13  ;;  %p2556_p12 = por %p2555_p6, %p2554_p2 }
  0x31   : > { %p2550_p1 = pneg %p2549_p10 }
  0x33   : > { %p2557_p0 = pnand %p2556_p12, %p2550_p1 }
  0x35   : > { %2560 = shalt.err (!%p2557_p0)
}
  0x36   : > { %s2776_s24 = smov 128   ;;  %s2777_s25 = smov 8  }
  0x37   : > { %2414 = dma.hbm_to_vmem [thread:$0]  (!%p2901_p11), %s3445_s2, 512, %s2894_s17, [#allocation10], %s2776_s24, %s2776_s24, %s2777_s25  }
  0x38   : > { %s3447_s3 = sld [smem:[#allocation24_spill]] }
  0x3e   : > { %s2561_s23 = scalar_lea.hbm %s3447_s3, 512 }
  0x3f   : > { %p2562_p1 = scmp.ne.s32.totalorder %s3447_s3, %s2561_s23  ;;  %p2568_p10 = scmp.lt.u32.totalorder %s2561_s23, %s3447_s3 }
  0x41   : > { %p2564_p2 = pnand %p2562_p1, %p2917_p13 }
  0x43   : > { %p2565_p6 = pneg %p2564_p2 }
  0x45   : > { %p2570_p3 = pnand %p2568_p10, %p2565_p6 }
  0x47   : > { %2573 = shalt.err (!%p2570_p3)
}
  0x48   : > { %s2574_s17 = scalar_lea.vmem %s2905_s20, 512  ;;  %p2582_p12 = scmp.lt.s32.totalorder %s2905_s20, %s2905_s20 }
  0x49   : > { %p2575_p5 = scmp.ne.s32.totalorder %s2905_s20, %s2574_s17  ;;  %p2583_p0 = scmp.lt.s32.totalorder %s2574_s17, %s2574_s17 }
  0x4b   : > { %p2577_p7 = pnand %p2575_p5, %p2917_p13  ;;  %p2584_p1 = por %p2583_p0, %p2582_p12 }
  0x4d   : > { %p2578_p9 = pneg %p2577_p7 }
  0x4f   : > { %p2585_p2 = pnand %p2584_p1, %p2578_p9 }
  0x51   : > { %2588 = shalt.err (!%p2585_p2)
}
  0x52   : > { %2417 = dma.hbm_to_vmem [thread:$0]  (!%p2901_p11), %s3447_s3, 512, %s2905_s20, [#allocation13], %s2776_s24, %s2776_s24, %s2777_s25  }
  0x53   : > { %s3448_s4 = sld [smem:[#allocation25_spill]] }
  0x59   : > { %s2589_s26 = scalar_lea.hbm %s3448_s4, 512 }
  0x5a   : > { %p2590_p6 = scmp.ne.s32.totalorder %s3448_s4, %s2589_s26  ;;  %p2596_p5 = scmp.lt.u32.totalorder %s2589_s26, %s3448_s4 }
  0x5c   : > { %p2592_p10 = pnand %p2590_p6, %p2917_p13 }
  0x5e   : > { %p2593_p3 = pneg %p2592_p10 }
  0x60   : > { %p2598_p7 = pnand %p2596_p5, %p2593_p3 }
  0x62   : > { %2601 = shalt.err (!%p2598_p7)
}
  0x63   : > { %s2602_s17 = scalar_lea.vmem %s301_s22, 512  ;;  %p2610_p1 = scmp.lt.s32.totalorder %s301_s22, %s301_s22 }
  0x64   : > { %p2603_p9 = scmp.ne.s32.totalorder %s301_s22, %s2602_s17  ;;  %p2611_p2 = scmp.lt.s32.totalorder %s2602_s17, %s2602_s17 }
  0x66   : > { %p2605_p12 = pnand %p2603_p9, %p2917_p13  ;;  %p2612_p4 = por %p2611_p2, %p2610_p1 }
  0x68   : > { %p2606_p0 = pneg %p2605_p12 }
  0x6a   : > { %p2613_p8 = pnand %p2612_p4, %p2606_p0 }
  0x6c   : > { %2616 = shalt.err (!%p2613_p8)
}
  0x6d   : > { %2420 = dma.hbm_to_vmem [thread:$0]  (!%p2901_p11), %s3448_s4, 512, %s301_s22, [#allocation13], %s2776_s24, %s2776_s24, %s2777_s25  }
  0x6e   : > { %s56_s16 = sadd.s32 1, %s2759_s29  ;;  %s47_s18 = sadd.s32 1, %s2767_s9 }
  0x6f   : > { %p63_p4 = scmp.ne.s32.totalorder %s2759_s29, %s2755_s28  ;;  %p49_p8 = scmp.ge.s32.totalorder %s47_s18, 2 }
  0x70   : > { %p64_p13 = scmp.eq.s32.totalorder %s2771_s10, 0  ;;  %p3449_p6 = scmp.eq.s32.totalorder %s2871_s11, 1 }
  0x71   : > { %p2435_p3 = scmp.lt.s32.totalorder %s2771_s10, 2  ;;  %s3471_s18 = smov (%p49_p8, %s47_s18), 0 }
  0x72   : > { %p2996_p10 = por %p3449_p6, %p63_p4  ;;  %p65_p5 = por %p64_p13, %p63_p4 }
  0x73   : > { %s323_s27 = sand.u32 1, %s2759_s29   ;;  %s51_s14 = ssub.s32 %s2767_s9, %s3471_s18 }
  0x74   : > { %s3450_s8 = scalar_select %p2996_p10, 1, 0 }
  0x75   : > { %p54_p11 = scmp.eq.s32.totalorder %s51_s14, 0  ;;  %s3006_s22 = sshll.u32 %s323_s27, 3 }
  0x76   : > { %s2231_s24 = sshll.u32 %s2767_s9, 7  ;;  %s327_s21 = scalar_lea.vmem [#allocation6], %s3006_s22 }
  0x77   : > { %s3010_s25 = scalar_select %p54_p11, %s2759_s29, %s56_s16  }
  0x78   : > { %s3015_s19 = scalar_lea.hbm %s3418_s0, %s2231_s24  ;;  %s335_s23 = sshll.u32 %s327_s21, 4  ;;  %s3018_s23 = int_to_ptr.vmem [resolvable:$true] %s335_s23 }
  0x79   : > { %p3022_p7 = pnand %p2435_p3, %p65_p5  ;;  %s3029_s16 = scalar_lea.hbm %s3419_s1, %s2231_s24 }
  0x7a   : > { %s342_s14 = sand.u32 1, %s2771_s10   ;;  %s324_s26 = scalar_lea.sflag [#allocation7], %s323_s27 }
  0x7b   : > { %s2617_s12 = scalar_lea.hbm %s3015_s19, 128  ;;  %p2619_p12 = pneg %p3022_p7 }
  0x7c   : > { %p2618_p9 = scmp.ne.s32.totalorder %s3015_s19, %s2617_s12  ;;  %s2622_s3 = scalar_lea.hbm %s3418_s0, 256 }
  0x7d   : > { %p2623_p2 = scmp.lt.u32.totalorder %s3015_s19, %s3418_s0  ;;  %p2624_p4 = scmp.lt.u32.totalorder %s2622_s3, %s2617_s12 }
  0x7e   : > { %p2620_p0 = pnand %p2619_p12, %p2618_p9  ;;  %p2626_p13 = scmp.lt.u32.totalorder %s2617_s12, %s3015_s19 }
  0x7f   : > { %p2625_p8 = por %p2624_p4, %p2623_p2 }
  0x80   : > { %p2621_p1 = pneg %p2620_p0 }
  0x81   : > { %p2627_p6 = por %p2626_p13, %p2625_p8 }
  0x83   : > { %p2628_p3 = pnand %p2627_p6, %p2621_p1 }
  0x85   : > { %2631 = shalt.err (!%p2628_p3)
}
  0x86   : > { %s2632_s27 = scalar_lea.vmem %s3018_s23, 128  ;;  %s2778_s2 = smov [#allocation6]  }
  0x87   : > { %p2633_p5 = scmp.ne.s32.totalorder %s3018_s23, %s2632_s27  ;;  %s2637_s24 = sshll.u32 %s2778_s2, 4  ;;  %s2638_s24 = int_to_ptr.vmem [resolvable:$false] %s2637_s24 }
  0x88   : > { %s2639_s4 = scalar_lea.vmem %s2638_s24, 256  ;;  %p2640_p0 = scmp.lt.s32.totalorder %s3018_s23, %s2638_s24 }
  0x89   : > { %p2635_p11 = pnand %p2633_p5, %p2619_p12  ;;  %p2641_p2 = scmp.lt.s32.totalorder %s2639_s4, %s2632_s27 }
  0x8b   : > { %p2636_p9 = pneg %p2635_p11  ;;  %p2642_p4 = por %p2641_p2, %p2640_p0 }
  0x8d   : > { %p2643_p8 = pnand %p2642_p4, %p2636_p9 }
  0x8f   : > { %2646 = shalt.err (!%p2643_p8)
}
  0x90   : > { %2424 = dma.hbm_to_vmem [thread:$0]  (!%p3022_p7), %s3015_s19, 128, %s3018_s23, %s324_s26  }
  0x91   : > { %s346_s3 = scalar_lea.vmem [#allocation9], %s3006_s22  ;;  %s343_s12 = scalar_lea.sflag [#allocation10], %s342_s14 }
  0x92   : > { %s354_s7 = sshll.u32 %s346_s3, 4  ;;  %s2647_s21 = scalar_lea.hbm %s3029_s16, 128  ;;  %s355_s7 = int_to_ptr.vmem [resolvable:$true] %s354_s7 }
  0x93   : > { %p2648_p1 = scmp.ne.s32.totalorder %s3029_s16, %s2647_s21  ;;  %s2652_s2 = scalar_lea.hbm %s3419_s1, 256 }
  0x94   : > { %p2653_p3 = scmp.lt.u32.totalorder %s3029_s16, %s3419_s1  ;;  %p2654_p5 = scmp.lt.u32.totalorder %s2652_s2, %s2647_s21 }
  0x95   : > { %p2650_p13 = pnand %p2648_p1, %p2619_p12  ;;  %p2656_p9 = scmp.lt.u32.totalorder %s2647_s21, %s3029_s16 }
  0x96   : > { %p2655_p11 = por %p2654_p5, %p2653_p3 }
  0x97   : > { %p2651_p6 = pneg %p2650_p13 }
  0x98   : > { %p2657_p0 = por %p2656_p9, %p2655_p11 }
  0x9a   : > { %p2658_p2 = pnand %p2657_p0, %p2651_p6 }
  0x9c   : > { %2661 = shalt.err (!%p2658_p2)
}
  0x9d   : > { %s2662_s22 = scalar_lea.vmem %s355_s7, 128  ;;  %s2779_s19 = smov [#allocation9]  }
  0x9e   : > { %p2663_p4 = scmp.ne.s32.totalorder %s355_s7, %s2662_s22  ;;  %s2667_s23 = sshll.u32 %s2779_s19, 4  ;;  %s2668_s23 = int_to_ptr.vmem [resolvable:$false] %s2667_s23 }
  0x9f   : > { %s2669_s14 = scalar_lea.vmem %s2668_s23, 256  ;;  %p2670_p13 = scmp.lt.s32.totalorder %s355_s7, %s2668_s23 }
  0xa0   : > { %p2665_p8 = pnand %p2663_p4, %p2619_p12  ;;  %p2671_p10 = scmp.lt.s32.totalorder %s2669_s14, %s2662_s22 }
  0xa2   : > { %p2666_p1 = pneg %p2665_p8  ;;  %p2672_p3 = por %p2671_p10, %p2670_p13 }
  0xa4   : > { %p2673_p5 = pnand %p2672_p3, %p2666_p1 }
  0xa6   : > { %2676 = shalt.err (!%p2673_p5)
}
  0xa7   : > { %2427 = dma.hbm_to_vmem [thread:$0]  (!%p3022_p7), %s3029_s16, 128, %s355_s7, %s343_s12  }
  0xa8   : > { %p3452_p6 = scmp.ne.s32.totalorder %s3443_s15, 0 }
  0xa9   : > { %s3082_s26 = sand.u32 (!%p3452_p6), 1, %s2755_s28   ;;  %p3453_p10 = scmp.ne.s32.totalorder (!%p3452_p6), %s3440_s13, 0 }
  0xaa   : > { %363 = sbr.rel (%p3452_p6) target bundleno = 1741 (0x6cd), region = 52  ;;  %s3085_s3 = sshll.u32 (!%p3452_p6), %s3082_s26, 3 }
  0xab   : > { %s366_s21 = scalar_lea.sflag (!%p3452_p6), [#allocation7], %s3082_s26  ;;  %s369_s20 = scalar_lea.vmem (!%p3452_p6), [#allocation6], %s3085_s3 }
  0xb1   : > { %2730 = dma.done.wait (%p3453_p10), %s366_s21, 128  }
  0xb2   : > { %2732 = vsyncadd (%p3453_p10), %s366_s21, 4294967168  ;;  %s374_s15 = sand.u32 1, %s2871_s11   ;;  %s378_s16 = scalar_lea.vmem [#allocation9], %s3085_s3 }
  0xb3   : > { %s375_s17 = scalar_lea.sflag [#allocation10], %s374_s15 }
  0xb4   : > { %2734 = dma.done.wait (%p3453_p10), %s375_s17, 128  }
  0xb5   : > { %2736 = vsyncadd (%p3453_p10), %s375_s17, 4294967168  ;;  %p3454_p7 = scmp.eq.s32.totalorder %s2871_s11, 0 }
  0xb7   : > { %2738 = dma.done.wait (%p3454_p7), [#allocation10], 512   ;;  %p3455_p12 = pmov %p3454_p7 }
  0xb8   : > { %p3456_p11 = pmov %p3454_p7 }
  0xb9   : > { %2740 = vsyncadd (%p3455_p12), [#allocation10], 4294966784 }
  0xba   : > { %2742 = dma.done.wait (%p3456_p11), [#allocation13], 1024   ;;  %p3457_p9 = pmov %p3454_p7 }
  0xbb   : > { %v2780_v0 = vmov 0.0|0.0   ;;  %vm2781_vm0 = vmmov 0   ;;  %v2782_v1 = vmov 0.0   ;;  %v433_v2 = vld [vmem:[#allocation11] sm:$0xff]  ;;  %v434_v3 = vld [vmem:[#allocation11 + $0x8] sm:$0xff]  ;;  %v435_v7 = vld [vmem:[#allocation11 + $0x10] sm:$0xff]  ;;  %v533_v26 = vlaneseq }
  0xbc   : > { %2744 = vsyncadd (%p3457_p9), [#allocation13], 4294966272  ;;  %2375 = vmatprep.subr.bf16.mxu0 %v2780_v0  ;;  %2381 = vmatprep.subr.bf16.mxu1 %v2780_v0  ;;  %v683_v4 = vld [vmem:[#allocation12] sm:$0xff]  ;;  %v2376_v5 = vpack.c.bf16 %v434_v3, %v433_v2  ;;  %v684_v6 = vld [vmem:[#allocation12 + $0x8] sm:$0xff]  ;;  %vm444_vm1 = vcmask 261120   ;;  %vm664_vm2 = vcmask 64512  }
  0xbd   : > { %2310 = vmatprep.mubr.msk.f32.mxu0 %vm2781_vm0, %v2782_v1  ;;  %2321 = vmatprep.mubr.msk.f32.mxu1 %vm2781_vm0, %v2782_v1  ;;  %v436_v8 = vld [vmem:[#allocation11 + $0x18] sm:$0xff]  ;;  %v2382_v9 = vpack.c.bf16 %v684_v6, %v683_v4  ;;  %v685_v10 = vld [vmem:[#allocation12 + $0x10] sm:$0xff]  ;;  %v432_v14 = vld [vmem:[%s369_s20] sm:$0xff]  ;;  %678 = vst.msk [vmem:[#allocation5] sm:$0xff] %vm664_vm2, %v2782_v1  ;;  %s2783_s27 = smov 104   ;;  %s2784_s2 = smov 120  }
  0xbe   : > { %v686_v11 = vld [vmem:[#allocation12 + $0x18] sm:$0xff]  ;;  %2377 = vmatpush3.bf16.msra.mxu0 %v2376_v5  ;;  %v2379_v12 = vpack.c.bf16 %v436_v8, %v435_v7  ;;  %679 = vst.msk [vmem:[#allocation5 + $0x8] sm:$0xff] %vm664_vm2, %v2782_v1  ;;  %680 = vst.msk [vmem:[#allocation5 + $0x10] sm:$0xff] %vm664_vm2, %v2782_v1  ;;  %v2241_v16 = vld [vmem:[%s3423_s5] ss:$0 sm:$0xff]  ;;  %s2785_s24 = smov 112  }
  0xbf   : > { %2378 = vmatprep.subr.bf16.mxu0 %v2780_v0  ;;  %2383 = vmatpush3.bf16.msra.mxu1 %v2382_v9  ;;  %v2385_v13 = vpack.c.bf16 %v686_v11, %v685_v10  ;;  %v682_v15 = vld [vmem:[%s378_s16] sm:$0xff]  ;;  %681 = vst.msk [vmem:[#allocation5 + $0x18] sm:$0xff] %vm664_vm2, %v2782_v1  ;;  %v2245_v18 = vld [vmem:[%s3424_s6] ss:$0 sm:$0xff]  ;;  %v2786_v24 = vmov 1983009808  }
  0xc0   : > { %2384 = vmatprep.subr.bf16.mxu1 %v2780_v0  ;;  %v531_v25 = vunpack.c.l.s4 %v2786_v24  ;;  %v2787_v27 = vmov 1934713408   ;;  %v534_v30 = vshrl.u32 %v533_v26, 7  ;;  %vm669_vm3 = vcmask 7168   ;;  %s2790_s4 = smov 96   ;;  %s2791_s22 = smov 16  }
  0xc1   : > { %v563_v28 = vunpack.c.l.s4 %v2787_v27  ;;  %674 = vst.msk [vmem:[#allocation4] sm:$0xff] %vm669_vm3, %v2782_v1  ;;  %675 = vst.msk [vmem:[#allocation4 + $0x8] sm:$0xff] %vm669_vm3, %v2782_v1  ;;  %s2792_s19 = smov 8   ;;  %s2793_s23 = smov 24   ;;  %vm1984_vm4 = vcmask 130048   ;;  %vm1986_vm5 = vcmask 195584  }
  0xc2   : > { %2380 = vmatpush3.bf16.msra.mxu0 %v2379_v12  ;;  %v532_v29 = vunpack.c.0.s8 %v531_v25  ;;  %676 = vst.msk [vmem:[#allocation4 + $0x10] sm:$0xff] %vm669_vm3, %v2782_v1  ;;  %677 = vst.msk [vmem:[#allocation4 + $0x18] sm:$0xff] %vm669_vm3, %v2782_v1  ;;  %s3458_s20 = sld [smem:[#allocation26_spill]]  ;;  %s2268_s15 = sshll.u32 %s2763_s30, 7 }
  0xc3   : > { %2386 = vmatpush3.bf16.msra.mxu1 %v2385_v13  ;;  %2334 = vmatprep.subr.mxu0 %v2782_v1  ;;  %v564_v33 = vunpack.c.0.s8 %v563_v28  ;;  %s427_s17 = scalar_lea.vmem [#allocation15], %s3085_s3  ;;  %s3459_s7 = sld [smem:[#allocation27_spill]] }
  0xc4   : > { %2324 = vmatprep.subr.mxu1 %v2782_v1  ;;  %v3146_v34 = vsub.s32 %v532_v29, %v534_v30  ;;  %s2088_s16 = sshll.u32 %s427_s17, 4  ;;  %p3460_p2 = scmp.ne.s32.totalorder %s3450_s8, 0  ;;  %s3370_s16 = int_to_ptr.vmem [resolvable:$true] %s2088_s16 }
  0xc5   : > { %2311 = vmatmul.mubr.msk.f32.vlgmr.msra.gmra.mrb[0].mxu0 %vm444_vm1, %v432_v14  ;;  %v3150_v41 = vsub.s32 %v564_v33, %v534_v30  ;;  %s2794_s30 = smov [#allocation15]  }
  0xc6   : > { %2322 = vmatmul.mubr.msk.f32.vlgmr.msra.gmra.mrb[0].mxu1 %vm444_vm1, %v682_v15  ;;  %2336 = vmatprep.mubr.msk.f32.mxu0 %vm2781_vm0, %v2782_v1  ;;  %s2681_s3 = sshll.u32 %s2794_s30, 4  ;;  %s2682_s3 = int_to_ptr.vmem [resolvable:$false] %s2681_s3 }
  0xc7   : > { %2326 = vmatprep.mubr.msk.f32.mxu1 %vm2781_vm0, %v2782_v1  ;;  %p2684_p1 = scmp.lt.s32.totalorder %s3370_s16, %s2682_s3 }
  0xc9   : > { %s3368_s12 = scalar_lea.hbm %s3459_s7, %s2268_s15 }
 0x198   : > { %v514_v17 = vpop.f32.mrb[0].mxu0 }
 0x199   : > { %v515_v19 = vadd.f32 %v2241_v16, %v514_v17  ;;  %v2312_v20 = vpop.f32.mrb[1].mxu0  ;;  %v764_v21 = vpop.f32.mrb[0].mxu1 }
 0x19a   : > { %v2323_v22 = vpop.f32.mrb[1].mxu1  ;;  %v3141_v23 = vadd.f32 %v2245_v18, %v764_v21 }
 0x19b   : > { %525 = vrot.lane.b32.xlu1 %v515_v19, %s2783_s27  ;;  %519 = vrot.lane.b32.xlu0 %v515_v19, %s2784_s2 }
 0x19f   : > { %769 = vrot.lane.b32.xlu1 %v3141_v23, %s2784_s2  ;;  %522 = vrot.lane.b32.xlu0 %v515_v19, %s2785_s24  ;;  %s2677_s2 = scalar_lea.vmem %s3370_s16, 128 }
 0x1a0   : > { %p2678_p0 = scmp.ne.s32.totalorder %s3370_s16, %s2677_s2 }
 0x1a2   : > { %p2679_p4 = pnand %p2678_p0, %p3460_p2 }
 0x1a3   : > { %775 = vrot.lane.b32.xlu1 %v3141_v23, %s2783_s27  ;;  %772 = vrot.lane.b32.xlu0 %v3141_v23, %s2785_s24  ;;  %s2074_s27 = scalar_lea.sflag [#allocation8], %s3082_s26  ;;  %s2683_s24 = scalar_lea.vmem %s2682_s3, 256 }
 0x1a4   : > { %p2680_p8 = pneg %p2679_p4  ;;  %p2685_p13 = scmp.lt.s32.totalorder %s2683_s24, %s2677_s2 }
 0x1a6   : > { %p2686_p3 = por %p2685_p13, %p2684_p1 }
 0x1a8   : > { %p2687_p5 = pnand %p2686_p3, %p2680_p8 }
 0x20d   : > { %v526_v31 = vpop.permute.xlu1 %525  ;;  %v520_v32 = vpop.permute.xlu0 %519 }
 0x20e   : > { %v544_v35 = vcombine.low %v520_v32, %v526_v31  ;;  %v545_v36 = vcombine.high %v520_v32, %v526_v31 }
 0x210   : > { %v552_v42 = vrot.slane %v544_v35, %v3146_v34  ;;  %v559_v43 = vrot.slane %v545_v36, %v3146_v34 }
 0x211   : > { %v3148_v37 = vpop.permute.xlu1 %769  ;;  %v523_v38 = vpop.permute.xlu0 %522 }
 0x212   : > { %v528_v39 = vcombine.low %v515_v19, %v523_v38  ;;  %v529_v40 = vcombine.high %v515_v19, %v523_v38 }
 0x214   : > { %v536_v44 = vrot.slane %v528_v39, %v3146_v34  ;;  %v543_v45 = vrot.slane %v529_v40, %v3146_v34 }
 0x215   : > { %v3156_v46 = vpop.permute.xlu1 %775  ;;  %v3158_v47 = vpop.permute.xlu0 %772 }
 0x216   : > { %v560_v48 = vcombine.low %v536_v44, %v552_v42  ;;  %v561_v49 = vcombine.high %v536_v44, %v552_v42  ;;  %v576_v50 = vcombine.low %v543_v45, %v559_v43  ;;  %v577_v51 = vcombine.high %v543_v45, %v559_v43 }
 0x217   : > { %v794_v52 = vcombine.low %v3148_v37, %v3156_v46  ;;  %v795_v53 = vcombine.high %v3148_v37, %v3156_v46  ;;  %v778_v54 = vcombine.low %v3141_v23, %v3158_v47  ;;  %v779_v55 = vcombine.high %v3141_v23, %v3158_v47 }
 0x218   : > { %v568_v56 = vrot.slane %v560_v48, %v3150_v41  ;;  %v575_v57 = vrot.slane %v561_v49, %v3150_v41  ;;  %v584_v58 = vrot.slane %v576_v50, %v3150_v41  ;;  %v591_v59 = vrot.slane %v577_v51, %v3150_v41 }
 0x219   : > { %v802_v60 = vrot.slane %v794_v52, %v3146_v34  ;;  %v809_v61 = vrot.slane %v795_v53, %v3146_v34  ;;  %v786_v62 = vrot.slane %v778_v54, %v3146_v34  ;;  %v793_v63 = vrot.slane %v779_v55, %v3146_v34 }
 0x21a   : > { %v596_v2 = vcombine.low %v568_v56, %v575_v57  ;;  %v2243_v3 = vcombine.high %v568_v56, %v575_v57  ;;  %v612_v4 = vcombine.low %v584_v58, %v591_v59  ;;  %v2244_v5 = vcombine.high %v584_v58, %v591_v59 }
 0x21b   : > { %v810_v6 = vcombine.low %v786_v62, %v802_v60  ;;  %v811_v7 = vcombine.high %v786_v62, %v802_v60  ;;  %v826_v8 = vcombine.low %v793_v63, %v809_v61  ;;  %v827_v9 = vcombine.high %v793_v63, %v809_v61 }
 0x21c   : > { %v603_v10 = vrot.slane %v596_v2, %v3146_v34  ;;  %v611_v11 = vrot.slane %v2243_v3, %v3146_v34  ;;  %v619_v12 = vrot.slane %v612_v4, %v3146_v34  ;;  %v627_v13 = vrot.slane %v2244_v5, %v3146_v34 }
 0x21d   : > { %v818_v14 = vrot.slane %v810_v6, %v3150_v41  ;;  %v825_v15 = vrot.slane %v811_v7, %v3150_v41  ;;  %v834_v16 = vrot.slane %v826_v8, %v3150_v41  ;;  %v841_v17 = vrot.slane %v827_v9, %v3150_v41 }
 0x21e   : > { %v628_v18 = vcombine.low %v603_v10, %v611_v11  ;;  %v629_v19 = vcombine.high %v603_v10, %v611_v11  ;;  %v644_v20 = vcombine.low %v619_v12, %v627_v13  ;;  %v645_v21 = vcombine.high %v619_v12, %v627_v13 }
 0x21f   : > { %v846_v22 = vcombine.low %v818_v14, %v825_v15  ;;  %v2247_v24 = vcombine.high %v818_v14, %v825_v15  ;;  %v862_v25 = vcombine.low %v834_v16, %v841_v17  ;;  %v2248_v26 = vcombine.high %v834_v16, %v841_v17 }
 0x220   : > { %v636_v27 = vrot.slane %v628_v18, %v3150_v41  ;;  %v643_v28 = vrot.slane %v629_v19, %v3150_v41  ;;  %v652_v29 = vrot.slane %v644_v20, %v3150_v41  ;;  %v659_v30 = vrot.slane %v645_v21, %v3150_v41 }
 0x221   : > { %v853_v31 = vrot.slane %v846_v22, %v3146_v34  ;;  %v861_v32 = vrot.slane %v2247_v24, %v3146_v34  ;;  %v869_v33 = vrot.slane %v862_v25, %v3146_v34  ;;  %v877_v35 = vrot.slane %v2248_v26, %v3146_v34 }
 0x222   : > { %v660_v36 = vcombine.low %v636_v27, %v652_v29  ;;  %v661_v38 = vcombine.high %v636_v27, %v652_v29  ;;  %v662_v39 = vcombine.low %v643_v28, %v659_v30  ;;  %v663_v40 = vcombine.high %v643_v28, %v659_v30 }
 0x223   : > { %v878_v42 = vcombine.low %v853_v31, %v861_v32  ;;  %v879_v43 = vcombine.high %v853_v31, %v861_v32  ;;  %v894_v44 = vcombine.low %v869_v33, %v877_v35  ;;  %v895_v45 = vcombine.high %v869_v33, %v877_v35 }
 0x224   : > { %665 = vst.msk [vmem:[#allocation2] sm:$0xff] %vm664_vm2, %v660_v36  ;;  %666 = vst.msk [vmem:[#allocation2 + $0x8] sm:$0xff] %vm664_vm2, %v661_v38  ;;  %v2788_v60 = vmov -inf   ;;  %v2789_v11 = vmov 0  }
 0x225   : > { %667 = vst.msk [vmem:[#allocation2 + $0x10] sm:$0xff] %vm664_vm2, %v662_v39  ;;  %668 = vst.msk [vmem:[#allocation2 + $0x18] sm:$0xff] %vm664_vm2, %v663_v40  ;;  %v886_v48 = vrot.slane %v878_v42, %v3150_v41  ;;  %v902_v49 = vrot.slane %v894_v44, %v3150_v41  ;;  %v893_v50 = vrot.slane %v879_v43, %v3150_v41  ;;  %2507 = vset.pattern.permute.xlu1 %v2789_v11 }
 0x226   : > { %v909_v51 = vrot.slane %v895_v45, %v3150_v41  ;;  %670 = vst.msk [vmem:[#allocation3] sm:$0xff] %vm669_vm3, %v2788_v60  ;;  %671 = vst.msk [vmem:[#allocation3 + $0x8] sm:$0xff] %vm669_vm3, %v2788_v60  ;;  %2508 = vset.pattern.permute.xlu0 %v2789_v11 }
 0x227   : > { %v910_v52 = vcombine.low %v886_v48, %v902_v49  ;;  %v911_v55 = vcombine.high %v886_v48, %v902_v49  ;;  %672 = vst.msk [vmem:[#allocation3 + $0x10] sm:$0xff] %vm669_vm3, %v2788_v60  ;;  %673 = vst.msk [vmem:[#allocation3 + $0x18] sm:$0xff] %vm669_vm3, %v2788_v60 }
 0x228   : > { %v912_v53 = vcombine.low %v893_v50, %v909_v51  ;;  %v913_v58 = vcombine.high %v893_v50, %v909_v51 }
 0x229   : > { %2325 = vmatpush3.xpose.msk.msra.mxu1 %vm664_vm2, %v910_v52 }
 0x22a   : > { %2335 = vmatpush3.xpose.msk.msra.mxu0 %vm664_vm2, %v912_v53  ;;  %2329 = vmatprep.subr.mxu1 %v2782_v1 }
 0x22b   : > { %2344 = vmatprep.subr.mxu0 %v2782_v1  ;;  %v1062_v54 = vld [vmem:[#allocation2] sm:$0xff]  ;;  %v1063_v57 = vld [vmem:[#allocation2 + $0x8] sm:$0xff] }
 0x22c   : > { %v1064_v56 = vld [vmem:[#allocation2 + $0x10] sm:$0xff]  ;;  %2327 = vmatmul.mubr.msk.f32.vlgmr.msra.gmra.mrb[2].mxu1 %vm664_vm2, %v1062_v54  ;;  %v1065_v59 = vld [vmem:[#allocation2 + $0x18] sm:$0xff] }
 0x22d   : > { %2337 = vmatmul.mubr.msk.f32.vlgmr.msra.gmra.mrb[2].mxu0 %vm664_vm2, %v1064_v56  ;;  %2330 = vmatpush3.xpose.msk.msra.mxu1 %vm664_vm2, %v911_v55  ;;  %v3242_v12 = vld [vmem:[#allocation3] sm:$0xff]  ;;  %v3247_v15 = vld [vmem:[#allocation3 + $0x8] sm:$0xff] }
 0x22e   : > { %2331 = vmatprep.mubr.msk.f32.mxu1 %vm2781_vm0, %v2782_v1  ;;  %2339 = vmatprep.subr.mxu1 %v2782_v1  ;;  %v3249_v16 = vld [vmem:[#allocation3 + $0x10] sm:$0xff]  ;;  %v3262_v22 = vld [vmem:[#allocation3 + $0x18] sm:$0xff] }
 0x22f   : > { %2346 = vmatprep.mubr.msk.f32.mxu0 %vm2781_vm0, %v2782_v1 }
 0x230   : > { %2332 = vmatmul.mubr.msk.f32.vlgmr.msra.gmra.mrb[4].mxu1 %vm664_vm2, %v1063_v57 }
 0x231   : > { %2340 = vmatpush3.xpose.msk.msra.mxu1 %vm664_vm2, %v913_v58  ;;  %2341 = vmatprep.mubr.msk.f32.mxu1 %vm2781_vm0, %v2782_v1 }
 0x232   : > { %2349 = vmatprep.subr.mxu1 %v2782_v1 }
 0x234   : > { %2342 = vmatmul.mubr.msk.f32.vlgmr.msra.gmra.mrb[6].mxu1 %vm664_vm2, %v1065_v59 }
 0x235   : > { %2351 = vmatprep.mubr.msk.f32.mxu1 %vm2781_vm0, %v2782_v1 }
 0x2ff   : > { %v1139_v61 = vpop.f32.mrb[2].mxu1 }
 0x300   : > { %v3232_v62 = vpop.f32.mrb[2].mxu0  ;;  %v2328_v63 = vpop.f32.mrb[3].mxu1  ;;  %v1375_v3 = vsel %vm664_vm2, %v1139_v61, -inf }
 0x301   : > { %v2338_v2 = vpop.f32.mrb[3].mxu0  ;;  %1376 = vmax.xlane.f32.xlu0 %v1375_v3  ;;  %v1381_v7 = vsel %vm664_vm2, %v3232_v62, -inf }
 0x303   : > { %v1215_v4 = vpop.f32.mrb[4].mxu1 }
 0x304   : > { %v2333_v5 = vpop.f32.mrb[5].mxu1  ;;  %v1378_v6 = vsel %vm664_vm2, %v1215_v4, -inf }
 0x305   : > { %1379 = vmax.xlane.f32.xlu1 %v1378_v6  ;;  %1382 = vmax.xlane.f32.xlu0 %v1381_v7 }
 0x307   : > { %v3238_v8 = vpop.f32.mrb[6].mxu1 }
 0x308   : > { %v2343_v9 = vpop.f32.mrb[7].mxu1  ;;  %v1384_v10 = vsel %vm664_vm2, %v3238_v8, -inf }
 0x309   : > { %1385 = vmax.xlane.f32.xlu0 %v1384_v10 }
 0x38e   : > { %v1377_v13 = vpop.xlane.xlu0 %1376 }
 0x38f   : > { %v3245_v14 = vmax.f32 %v3242_v12, %v1377_v13 }
 0x391   : > { %v1391_v17 = vsub.f32 %v3242_v12, %v3245_v14  ;;  %1792 = vst.msk [vmem:[#allocation3] sm:$0xff] %vm669_vm3, %v3245_v14  ;;  %1405 = vperm.xlu1 %2507, %v3245_v14  }
 0x392   : > { %v1380_v18 = vpop.xlane.xlu1 %1379  ;;  %v1383_v19 = vpop.xlane.xlu0 %1382 }
 0x393   : > { %v3257_v20 = vmax.f32 %v3247_v15, %v1380_v18  ;;  %v3260_v21 = vmax.f32 %v3249_v16, %v1383_v19 }
 0x395   : > { %v1392_v24 = vsub.f32 %v3247_v15, %v3257_v20  ;;  %1793 = vst.msk [vmem:[#allocation3 + $0x8] sm:$0xff] %vm669_vm3, %v3257_v20  ;;  %v1393_v25 = vsub.f32 %v3249_v16, %v3260_v21  ;;  %1794 = vst.msk [vmem:[#allocation3 + $0x10] sm:$0xff] %vm669_vm3, %v3260_v21  ;;  %914 = vrot.lane.b32.xlu1 %v3141_v23, %s2790_s4  ;;  %1410 = vperm.xlu0 %2508, %v3257_v20   ;;  %v1435_v16 = vld [vmem:[#allocation4] sm:$0xff] }
 0x396   : > { %v1386_v26 = vpop.xlane.xlu0 %1385 }
 0x397   : > { %v3275_v27 = vmax.f32 %v3262_v22, %v1386_v26  ;;  %v1399_v12 = vmul.f32 1.442695, %v1393_v25 }
 0x399   : > { %v1394_v28 = vsub.f32 %v3262_v22, %v3275_v27  ;;  %1795 = vst.msk [vmem:[#allocation3 + $0x18] sm:$0xff] %vm669_vm3, %v3275_v27  ;;  %916 = vrot.lane.b32.xlu1 %v3148_v37, %s2790_s4 }
 0x39b   : > { %v1401_v14 = vmul.f32 1.442695, %v1394_v28 }
 0x39d   : > { %918 = vrot.lane.b32.xlu1 %v3158_v47, %s2790_s4 }
 0x3a1   : > { %920 = vrot.lane.b32.xlu1 %v3156_v46, %s2790_s4 }
 0x3a5   : > { %1415 = vperm.xlu1 %2507, %v3260_v21  }
 0x3a9   : > { %1420 = vperm.xlu1 %2507, %v3275_v27  }
 0x410   : > { %v1406_v23 = vpop.permute.xlu1 %1405 }
 0x411   : > { %v1423_v29 = vsub.f32 %v1139_v61, %v1406_v23 }
 0x413   : > { %v1427_v30 = vmul.f32 1.442695, %v1423_v29 }
 0x414   : > { %v915_v31 = vpop.permute.xlu1 %914  ;;  %v1411_v32 = vpop.permute.xlu0 %1410 }
 0x415   : > { %2509 = vpow2.f32 %v1427_v30  ;;  %v1424_v33 = vsub.f32 %v1215_v4, %v1411_v32 }
 0x417   : > { %v1429_v35 = vmul.f32 1.442695, %v1424_v33 }
 0x418   : > { %v917_v36 = vpop.permute.xlu1 %916 }
 0x419   : > { %2511 = vpow2.f32 %v1429_v35 }
 0x41c   : > { %v919_v38 = vpop.permute.xlu1 %918 }
 0x41d   : > { %v926_v39 = vcombine.low %v915_v31, %v919_v38  ;;  %v927_v47 = vcombine.high %v915_v31, %v919_v38 }
 0x41f   : > { %v2510_v37 = vpop.eup %2509  ;;  %v934_v45 = vrot.slane %v926_v39, %v3146_v34  ;;  %v941_v48 = vrot.slane %v927_v47, %v3146_v34 }
 0x420   : > { %v921_v40 = vpop.permute.xlu1 %920  ;;  %v1443_v46 = vsel %vm664_vm2, %v2510_v37, 0.0 }
 0x421   : > { %v942_v42 = vcombine.low %v917_v36, %v921_v40  ;;  %v943_v43 = vcombine.high %v917_v36, %v921_v40  ;;  %1444 = vadd.xlane.f32.xlu1 %v1443_v46 }
 0x423   : > { %v2512_v44 = vpop.eup %2511  ;;  %v950_v49 = vrot.slane %v942_v42, %v3146_v34  ;;  %v957_v50 = vrot.slane %v943_v43, %v3146_v34 }
 0x424   : > { %v1416_v51 = vpop.permute.xlu1 %1415  ;;  %v1446_v52 = vsel %vm664_vm2, %v2512_v44, 0.0 }
 0x425   : > { %v958_v53 = vcombine.low %v934_v45, %v950_v49  ;;  %v959_v54 = vcombine.high %v934_v45, %v950_v49  ;;  %v974_v55 = vcombine.low %v941_v48, %v957_v50  ;;  %v975_v56 = vcombine.high %v941_v48, %v957_v50  ;;  %1447 = vadd.xlane.f32.xlu0 %v1446_v52  ;;  %v1437_v45 = vld [vmem:[#allocation4 + $0x10] sm:$0xff] }
 0x426   : > { %v1425_v57 = vsub.f32 %v3232_v62, %v1416_v51  ;;  %v1438_v51 = vld [vmem:[#allocation4 + $0x18] sm:$0xff] }
 0x427   : > { %v966_v58 = vrot.slane %v958_v53, %v3150_v41  ;;  %v973_v59 = vrot.slane %v959_v54, %v3150_v41  ;;  %v982_v60 = vrot.slane %v974_v55, %v3150_v41  ;;  %v989_v61 = vrot.slane %v975_v56, %v3150_v41 }
 0x428   : > { %v1431_v63 = vmul.f32 1.442695, %v1425_v57  ;;  %v1421_v2 = vpop.permute.xlu1 %1420 }
 0x429   : > { %v994_v3 = vcombine.low %v966_v58, %v973_v59  ;;  %v2249_v4 = vcombine.high %v966_v58, %v973_v59  ;;  %v1010_v5 = vcombine.low %v982_v60, %v989_v61  ;;  %v2250_v6 = vcombine.high %v982_v60, %v989_v61  ;;  %v1988_v61 = vld [vmem:[#allocation14] sm:$0xff] }
 0x42a   : > { %2513 = vpow2.f32 %v1431_v63  ;;  %v1426_v7 = vsub.f32 %v3238_v8, %v1421_v2  ;;  %v1989_v63 = vld [vmem:[#allocation14 + $0x8] sm:$0xff] }
 0x42b   : > { %v1001_v9 = vrot.slane %v994_v3, %v3146_v34  ;;  %v1009_v62 = vrot.slane %v2249_v4, %v3146_v34  ;;  %v1017_v10 = vrot.slane %v1010_v5, %v3146_v34  ;;  %v1025_v11 = vrot.slane %v2250_v6, %v3146_v34  ;;  %v1464_v5 = vld [vmem:[#allocation5] sm:$0xff]  ;;  %v1465_v6 = vld [vmem:[#allocation5 + $0x8] sm:$0xff] }
 0x42c   : > { %v1433_v13 = vmul.f32 1.442695, %v1426_v7  ;;  %v2388_v2 = vpack.c.bf16 %v1989_v63, %v1988_v61 }
 0x42d   : > { %v1026_v18 = vcombine.low %v1001_v9, %v1009_v62  ;;  %v1042_v19 = vcombine.low %v1017_v10, %v1025_v11  ;;  %v1027_v26 = vcombine.high %v1001_v9, %v1009_v62  ;;  %v1043_v23 = vcombine.high %v1017_v10, %v1025_v11  ;;  %v1466_v11 = vld [vmem:[#allocation5 + $0x10] sm:$0xff] }
 0x42e   : > { %2515 = vpow2.f32 %v1433_v13 }
 0x42f   : > { %v1034_v29 = vrot.slane %v1026_v18, %v3150_v41  ;;  %v1050_v30 = vrot.slane %v1042_v19, %v3150_v41  ;;  %v1041_v8 = vrot.slane %v1027_v26, %v3150_v41  ;;  %v1057_v31 = vrot.slane %v1043_v23, %v3150_v41  ;;  %v1467_v19 = vld [vmem:[#allocation5 + $0x18] sm:$0xff] }
 0x431   : > { %v1058_v32 = vcombine.low %v1034_v29, %v1050_v30  ;;  %v1059_v33 = vcombine.high %v1034_v29, %v1050_v30  ;;  %v1060_v36 = vcombine.low %v1041_v8, %v1057_v31  ;;  %v1061_v39 = vcombine.high %v1041_v8, %v1057_v31 }
 0x433   : > { %2345 = vmatpush3.msra.mxu0 %v1058_v32  ;;  %2350 = vmatpush3.msra.mxu1 %v1059_v33 }
 0x434   : > { %v2514_v35 = vpop.eup %2513  ;;  %2347 = vmatmul.mubr.msk.f32.vlgmr.msra.gmra.mrb[4].mxu0 %vm664_vm2, %v2510_v37  ;;  %2352 = vmatmul.mubr.msk.f32.vlgmr.msra.gmra.mrb[8].mxu1 %vm664_vm2, %v2512_v44  ;;  %v1395_v37 = vmul.f32 1.442695, %v1391_v17  ;;  %v1397_v17 = vmul.f32 1.442695, %v1392_v24  ;;  %v1436_v44 = vld [vmem:[#allocation4 + $0x8] sm:$0xff] }
 0x435   : > { %2354 = vmatprep.subr.mxu0 %v2782_v1  ;;  %2359 = vmatprep.subr.mxu1 %v2782_v1  ;;  %v1449_v38 = vsel %vm664_vm2, %v2514_v35, 0.0 }
 0x436   : > { %2355 = vmatpush3.msra.mxu0 %v1060_v36  ;;  %1450 = vadd.xlane.f32.xlu1 %v1449_v38  ;;  %2517 = vpow2.f32 %v1395_v37 }
 0x437   : > { %2360 = vmatpush3.msra.mxu1 %v1061_v39  ;;  %2356 = vmatprep.mubr.msk.f32.mxu0 %vm2781_vm0, %v2782_v1  ;;  %2519 = vpow2.f32 %v1399_v12 }
 0x438   : > { %v2516_v47 = vpop.eup %2515  ;;  %2361 = vmatprep.mubr.msk.f32.mxu1 %vm2781_vm0, %v2782_v1  ;;  %2357 = vmatmul.mubr.msk.f32.vlgmr.msra.gmra.mrb[6].mxu0 %vm664_vm2, %v2514_v35  ;;  %2521 = vpow2.f32 %v1401_v14 }
 0x439   : > { %2362 = vmatmul.mubr.msk.f32.vlgmr.msra.gmra.mrb[10].mxu1 %vm664_vm2, %v2516_v47  ;;  %v1452_v40 = vsel %vm664_vm2, %v2516_v47, 0.0  ;;  %2387 = vmatprep.subr.bf16.mxu0 %v2780_v0  ;;  %2523 = vpow2.f32 %v1397_v17 }
 0x43a   : > { %1453 = vadd.xlane.f32.xlu0 %v1452_v40  ;;  %2372 = vmatprep.mubr.msk.f32.mxu0 %vm2781_vm0, %v2782_v1 }
 0x43b   : > { %2389 = vmatpush3.bf16.msra.mxu0 %v2388_v2 }
 0x43c   : > { %2390 = vmatprep.subr.bf16.mxu0 %v2780_v0 }
 0x440   : > { %v2518_v46 = vpop.eup %2517 }
 0x441   : > { %v2520_v42 = vpop.eup %2519  ;;  %v1439_v21 = vmul.f32 %v2518_v46, %v1435_v16 }
 0x442   : > { %v2522_v1 = vpop.eup %2521  ;;  %v1441_v48 = vmul.f32 %v2520_v42, %v1437_v45 }
 0x443   : > { %v2524_v43 = vpop.eup %2523  ;;  %v1442_v53 = vmul.f32 %v2522_v1, %v1438_v51  ;;  %v1991_v51 = vld [vmem:[#allocation14 + $0x18] sm:$0xff] }
 0x444   : > { %v1440_v27 = vmul.f32 %v2524_v43, %v1436_v44 }
 0x447   : > { %1470 = vperm.xlu1 %2507, %v2518_v46  }
 0x44b   : > { %1480 = vperm.xlu1 %2507, %v2520_v42  }
 0x44f   : > { %1485 = vperm.xlu1 %2507, %v2522_v1  }
 0x450   : > { %1475 = vperm.xlu0 %2508, %v2524_v43  }
 0x4ae   : > { %v1445_v25 = vpop.xlane.xlu1 %1444 }
 0x4af   : > { %v1455_v22 = vadd.f32 %v1445_v25, %v1439_v21 }
 0x4b1   : > { %1460 = vst.msk [vmem:[#allocation4] sm:$0xff] %vm669_vm3, %v1455_v22 }
 0x4b2   : > { %v1448_v15 = vpop.xlane.xlu0 %1447 }
 0x4b3   : > { %v1456_v20 = vadd.f32 %v1448_v15, %v1440_v27 }
 0x4b5   : > { %1461 = vst.msk [vmem:[#allocation4 + $0x8] sm:$0xff] %vm669_vm3, %v1456_v20 }
 0x4b8   : > { %v1803_v24 = vld [vmem:[#allocation4] sm:$0xff] }
 0x4b9   : > { %2525 = vrcp.f32 %v1803_v24 }
 0x4bc   : > { %v1804_v28 = vld [vmem:[#allocation4 + $0x8] sm:$0xff] }
 0x4bd   : > { %2527 = vrcp.f32 %v1804_v28 }
 0x4c3   : > { %v2526_v49 = vpop.eup %2525  ;;  %v1451_v50 = vpop.xlane.xlu1 %1450 }
 0x4c4   : > { %v1457_v52 = vadd.f32 %v1451_v50, %v1441_v48  ;;  %1813 = vperm.xlu0 %2508, %v2526_v49   ;;  %v1990_v50 = vld [vmem:[#allocation14 + $0x10] sm:$0xff] }
 0x4c6   : > { %1462 = vst.msk [vmem:[#allocation4 + $0x10] sm:$0xff] %vm669_vm3, %v1457_v52 }
 0x4c7   : > { %v2528_v54 = vpop.eup %2527  ;;  %v1454_v55 = vpop.xlane.xlu0 %1453 }
 0x4c8   : > { %v1458_v56 = vadd.f32 %v1454_v55, %v1442_v53  ;;  %1818 = vperm.xlu1 %2507, %v2528_v54   ;;  %v1471_v3 = vpop.permute.xlu1 %1470 }
 0x4c9   : > { %v1488_v9 = vmul.f32 %v1471_v3, %v1464_v5 }
 0x4ca   : > { %1463 = vst.msk [vmem:[#allocation4 + $0x18] sm:$0xff] %vm669_vm3, %v1458_v56  ;;  %v2391_v56 = vpack.c.bf16 %v1991_v51, %v1990_v50 }
 0x4cc   : > { %v1481_v4 = vpop.permute.xlu1 %1480  ;;  %2392 = vmatpush3.bf16.msra.mxu0 %v2391_v56 }
 0x4cd   : > { %v1805_v57 = vld [vmem:[#allocation4 + $0x10] sm:$0xff]  ;;  %v1490_v8 = vmul.f32 %v1481_v4, %v1466_v11 }
 0x4ce   : > { %2529 = vrcp.f32 %v1805_v57 }
 0x4cf   : > { %v1476_v7 = vpop.permute.xlu0 %1475 }
 0x4d0   : > { %v1486_v62 = vpop.permute.xlu1 %1485  ;;  %v1489_v10 = vmul.f32 %v1476_v7, %v1465_v6 }
 0x4d1   : > { %v1806_v58 = vld [vmem:[#allocation4 + $0x18] sm:$0xff]  ;;  %v1491_v0 = vmul.f32 %v1486_v62, %v1467_v19 }
 0x4d2   : > { %2531 = vrcp.f32 %v1806_v58 }
 0x4d8   : > { %v2530_v59 = vpop.eup %2529 }
 0x4d9   : > { %1823 = vperm.xlu0 %2508, %v2530_v59  }
 0x4dc   : > { %v2532_v60 = vpop.eup %2531 }
 0x4dd   : > { %1828 = vperm.xlu1 %2507, %v2532_v60  }
 0x507   : > { %v1561_v13 = vpop.f32.mrb[4].mxu0  ;;  %v1634_v18 = vpop.f32.mrb[8].mxu1 }
 0x508   : > { %v1784_v26 = vadd.f32 %v1561_v13, %v1488_v9  ;;  %v1785_v23 = vadd.f32 %v1634_v18, %v1489_v10  ;;  %v2348_v29 = vpop.f32.mrb[5].mxu0  ;;  %v2353_v30 = vpop.f32.mrb[9].mxu1 }
 0x50a   : > { %1788 = vst.msk [vmem:[#allocation5] sm:$0xff] %vm664_vm2, %v1784_v26  ;;  %1789 = vst.msk [vmem:[#allocation5 + $0x8] sm:$0xff] %vm664_vm2, %v1785_v23 }
 0x50b   : > { %v1707_v31 = vpop.f32.mrb[6].mxu0 }
 0x50c   : > { %v1786_v32 = vadd.f32 %v1707_v31, %v1490_v8  ;;  %v1780_v33 = vpop.f32.mrb[10].mxu1  ;;  %v2358_v35 = vpop.f32.mrb[7].mxu0 }
 0x50d   : > { %v1787_v36 = vadd.f32 %v1780_v33, %v1491_v0  ;;  %v2363_v38 = vpop.f32.mrb[11].mxu1  ;;  %v2265_v0 = vld [vmem:[%s3458_s20] ss:$0 sm:$0xff] }
 0x50e   : > { %1790 = vst.msk [vmem:[#allocation5 + $0x10] sm:$0xff] %vm664_vm2, %v1786_v32 }
 0x50f   : > { %1791 = vst.msk [vmem:[#allocation5 + $0x18] sm:$0xff] %vm664_vm2, %v1787_v36 }
 0x511   : > { %v1799_v14 = vld [vmem:[#allocation5] sm:$0xff]  ;;  %v1800_v46 = vld [vmem:[#allocation5 + $0x8] sm:$0xff] }
 0x515   : > { %v1801_v40 = vld [vmem:[#allocation5 + $0x10] sm:$0xff] }
 0x516   : > { %v1802_v42 = vld [vmem:[#allocation5 + $0x18] sm:$0xff] }
 0x543   : > { %v1814_v39 = vpop.permute.xlu0 %1813 }
 0x544   : > { %v1831_v17 = vmul.f32 %v1814_v39, %v1799_v14 }
 0x547   : > { %v1819_v47 = vpop.permute.xlu1 %1818 }
 0x548   : > { %v1832_v43 = vmul.f32 %v1819_v47, %v1800_v46 }
 0x558   : > { %v1824_v37 = vpop.permute.xlu0 %1823 }
 0x559   : > { %v1833_v12 = vmul.f32 %v1824_v37, %v1801_v40 }
 0x55b   : > { %v1835_v16 = vcombine.low %v1831_v17, %v1833_v12  ;;  %v1836_v21 = vcombine.high %v1831_v17, %v1833_v12 }
 0x55c   : > { %v1829_v1 = vpop.permute.xlu1 %1828 }
 0x55d   : > { %v1834_v25 = vmul.f32 %v1829_v1, %v1802_v42  ;;  %v1843_v27 = vrot.slane %v1835_v16, %v3146_v34  ;;  %v1850_v15 = vrot.slane %v1836_v21, %v3146_v34 }
 0x55f   : > { %v1851_v44 = vcombine.low %v1832_v43, %v1834_v25  ;;  %v1852_v22 = vcombine.high %v1832_v43, %v1834_v25 }
 0x561   : > { %v1859_v20 = vrot.slane %v1851_v44, %v3146_v34  ;;  %v1866_v24 = vrot.slane %v1852_v22, %v3146_v34 }
 0x563   : > { %v1867_v28 = vcombine.low %v1843_v27, %v1859_v20  ;;  %v1868_v45 = vcombine.high %v1843_v27, %v1859_v20  ;;  %v1883_v48 = vcombine.low %v1850_v15, %v1866_v24  ;;  %v1884_v49 = vcombine.high %v1850_v15, %v1866_v24 }
 0x565   : > { %v1875_v52 = vrot.slane %v1867_v28, %v3150_v41  ;;  %v1882_v53 = vrot.slane %v1868_v45, %v3150_v41  ;;  %v1891_v54 = vrot.slane %v1883_v48, %v3150_v41  ;;  %v1898_v55 = vrot.slane %v1884_v49, %v3150_v41 }
 0x567   : > { %v1903_v57 = vcombine.low %v1875_v52, %v1882_v53  ;;  %v2263_v58 = vcombine.high %v1875_v52, %v1882_v53  ;;  %v1919_v59 = vcombine.low %v1891_v54, %v1898_v55  ;;  %v2264_v60 = vcombine.high %v1891_v54, %v1898_v55 }
 0x569   : > { %v1910_v61 = vrot.slane %v1903_v57, %v3146_v34  ;;  %v1918_v63 = vrot.slane %v2263_v58, %v3146_v34  ;;  %v1926_v2 = vrot.slane %v1919_v59, %v3146_v34  ;;  %v1934_v3 = vrot.slane %v2264_v60, %v3146_v34 }
 0x56b   : > { %v1936_v4 = vcombine.high %v1910_v61, %v1918_v63  ;;  %v1952_v5 = vcombine.high %v1926_v2, %v1934_v3  ;;  %v1935_v6 = vcombine.low %v1910_v61, %v1918_v63  ;;  %v1951_v7 = vcombine.low %v1926_v2, %v1934_v3 }
 0x56d   : > { %v1950_v9 = vrot.slane %v1936_v4, %v3150_v41  ;;  %v1966_v62 = vrot.slane %v1952_v5, %v3150_v41  ;;  %v1943_v10 = vrot.slane %v1935_v6, %v3150_v41  ;;  %v1959_v11 = vrot.slane %v1951_v7, %v3150_v41 }
 0x56f   : > { %v1969_v13 = vcombine.low %v1950_v9, %v1966_v62  ;;  %v1968_v18 = vcombine.high %v1943_v10, %v1959_v11  ;;  %v1967_v19 = vcombine.low %v1943_v10, %v1959_v11  ;;  %v1970_v34 = vcombine.high %v1950_v9, %v1966_v62 }
 0x571   : > { %1976 = vrot.lane.b32.xlu1 %v1969_v13, %s2791_s22  ;;  %1972 = vrot.lane.b32.xlu0 %v1968_v18, %s2792_s19 }
 0x575   : > { %1980 = vrot.lane.b32.xlu0 %v1970_v34, %s2793_s23 }
 0x5e3   : > { %v1973_v26 = vpop.permute.xlu0 %1972  ;;  %v1977_v23 = vpop.permute.xlu1 %1976 }
 0x5e4   : > { %v1983_v29 = vsel %vm664_vm2, %v1967_v19, %v1973_v26 }
 0x5e5   : > { %v1985_v30 = vsel %vm1984_vm4, %v1983_v29, %v1977_v23 }
 0x5e7   : > { %v1981_v41 = vpop.permute.xlu0 %1980 }
 0x5e8   : > { %v1987_v8 = vsel %vm1986_vm5, %v1985_v30, %v1981_v41 }
 0x5e9   : > { %2373 = vmatmul.mubr.msk.f32.vlgmr.msra.gmra.mrb[8].mxu0 %vm444_vm1, %v1987_v8 }
 0x6bc   : > { %v2068_v31 = vpop.f32.mrb[8].mxu0 }
 0x6bd   : > { %v2069_v32 = vadd.f32 %v2265_v0, %v2068_v31  ;;  %v2374_v33 = vpop.f32.mrb[9].mxu0 }
 0x6bf   : > { %2072 = vst.msk [vmem:[%s427_s17] sm:$0xff] %vm444_vm1, %v2069_v32 }
 0x6c0   : > { %2690 = shalt.err (!%p2687_p5)
}
 0x6c1   : > { %s2691_s26 = scalar_lea.hbm %s3368_s12, 128  ;;  %s2695_s19 = scalar_lea.hbm %s3459_s7, 256 }
 0x6c2   : > { %p2692_p6 = scmp.ne.s32.totalorder %s3368_s12, %s2691_s26  ;;  %p2696_p12 = scmp.lt.u32.totalorder %s3368_s12, %s3459_s7 }
 0x6c3   : > { %p2697_p11 = scmp.lt.u32.totalorder %s2695_s19, %s2691_s26  ;;  %p2699_p0 = scmp.lt.u32.totalorder %s2691_s26, %s3368_s12 }
 0x6c4   : > { %p2693_p10 = pnand %p2692_p6, %p3460_p2 }
 0x6c5   : > { %p2698_p9 = por %p2697_p11, %p2696_p12 }
 0x6c6   : > { %p2694_p7 = pneg %p2693_p10 }
 0x6c7   : > { %p2700_p4 = por %p2699_p0, %p2698_p9 }
 0x6c9   : > { %p2701_p8 = pnand %p2700_p4, %p2694_p7 }
 0x6cb   : > { %2704 = shalt.err (!%p2701_p8)
}
 0x6cc   : > { %2409 = dma.vmem_to_hbm [thread:$0]  (%p3460_p2), %s3370_s16, 128, %s3368_s12, %s2074_s27  }
 0x6cd PF: > { %s3461_s21 = sld [smem:[#allocation21_spill]]  ;;  %s3462_s20 = sld [smem:[#allocation22_spill]] }
 0x6ce   : > { %p3464_p13 = scmp.ge.s32.totalorder %s2771_s10, 2 }
 0x6d3   : > { %s2100_s15 = sand.u32 1, %s3461_s21   ;;  %p3463_p1 = scmp.ne.s32.totalorder %s3462_s20, 0 }
 0x6d4   : > { %s2101_s17 = scalar_lea.sflag [#allocation8], %s2100_s15 }
 0x6d5   : > { %p2429_p3 = pnand %p3464_p13, %p3463_p1 }
 0x6d7   : > { %2746 = dma.done.wait (!%p2429_p3), %s2101_s17, 128  }
 0x6d8   : > { %2748 = vsyncadd (!%p2429_p3), %s2101_s17, 4294967168  ;;  %s28_s10 = sadd.s32 1, %s2771_s10   ;;  %s3465_s27 = smov %s2755_s28 }
 0x6d9   : > { %p25_p5 = scmp.ge.s32.totalorder %s28_s10, 4   ;;  %s3466_s28 = smov %s2759_s29 }
 0x6da   : > { %s3467_s29 = smov %s3010_s25  ;;  %s3468_s30 = smov %s2767_s9 }
 0x6db   : > { %s3469_s9 = smov %s3471_s18  ;;  %27 = sbr.rel (!%p25_p5) target bundleno = 15 (0xf), region = 130 }
 0x6e2   :  { %2106 = vsyncpa [#allocation7], 1 }
 0x6e3   :  { %2108 = vsyncpa [#allocation7 + $0x1], 1 }
 0x6e4   :  { %2109 = vsyncpa [#allocation10], 1 }
 0x6e5   :  { %2111 = vsyncpa [#allocation10 + $0x1], 1 }
 0x6e6   :  { %2112 = vsyncpa [#allocation13], 1 }
 0x6e7   :  { %2113 = vsyncpa [#allocation8], 1 }
 0x6e8   :  { %2115 = vsyncpa [#allocation8 + $0x1], 1 }

</bundles_post_ra>
